<compile_context>
chip_gen: v7x
topology: tpu7x:2x2x1
jax: 0.10.0
libtpu: 0.0.40
codegen_flags: <defaults>
</compile_context>

<pallas_src>
import functools
import math

import jax
import jax.numpy as jnp
from jax.experimental import pallas as pl
from jax.experimental.pallas import tpu as pltpu


# ----------------------------------------------------------------------------
# Per-generation VMEM sizing (v7x has 64 MiB/core, v5e/v6e have 128 MiB).
# ----------------------------------------------------------------------------
def _tpu_vmem_capacity_bytes():
    try:
        info = pltpu.get_tpu_info()
        cap = getattr(info, "vmem_capacity_bytes", None)
        if cap:
            return int(cap)
    except Exception:
        pass
    return 64 * 1024 * 1024  # conservative: v7x per-core VMEM


_VMEM_CAP = _tpu_vmem_capacity_bytes()
_VMEM_LIMIT = min(int(_VMEM_CAP * 0.75), 96 * 1024 * 1024)
_VMEM_BLOCK_BUDGET = min(int(_VMEM_CAP * 0.5), 64 * 1024 * 1024)


def _pick_col_tile(N, cap=512):
    """Column-tile for weight/output N axis: full N if small, else a
    128-multiple divisor <= cap (falls back to cap; ragged tail is masked)."""
    if N <= cap:
        return N
    for t in range(cap, 127, -128):
        if N % t == 0:
            return t
    return cap


# ----------------------------------------------------------------------------
# Shared linear kernel body: o = x @ W + b  (bf16 operands, f32 accumulation).
# Weights / bias arrive already in their storage dtype (bf16 / f32) -> no
# in-kernel casts of the weight block.
# ----------------------------------------------------------------------------
def _linear_kernel(x_ref, w_ref, b_ref, o_ref):
    acc = jnp.dot(x_ref[...], w_ref[...], preferred_element_type=jnp.float32)
    o_ref[...] = (acc + b_ref[...]).astype(o_ref.dtype)


def linear_pallas(x2d, w, b, *, out_dtype=jnp.float32):
    """x2d: (M, K) bf16, w: (K, N) bf16, b: (1, N) f32 -> (M, N) out_dtype."""
    M, K = x2d.shape
    N = w.shape[1]
    tm = M if M <= 256 else 256
    tn = _pick_col_tile(N)
    grid = (pl.cdiv(M, tm), pl.cdiv(N, tn))
    cost = pl.CostEstimate(
        flops=2 * M * K * N,
        transcendentals=0,
        bytes_accessed=M * K * x2d.dtype.itemsize + K * N * w.dtype.itemsize
        + N * 4 + M * N * jnp.dtype(out_dtype).itemsize,
    )
    return pl.pallas_call(
        _linear_kernel,
        out_shape=jax.ShapeDtypeStruct((M, N), out_dtype),
        grid=grid,
        in_specs=[
            pl.BlockSpec((tm, K), lambda i, j: (i, 0)),   # activation row tile
            pl.BlockSpec((K, tn), lambda i, j: (0, j)),   # weight column tile
            pl.BlockSpec((1, tn), lambda i, j: (0, j)),   # bias tile
        ],
        out_specs=pl.BlockSpec((tm, tn), lambda i, j: (i, j)),
        compiler_params=pltpu.CompilerParams(
            dimension_semantics=("parallel", "parallel"),
            vmem_limit_bytes=_VMEM_LIMIT,
        ),
        cost_estimate=cost,
    )(x2d, w, b)


def qkv_proj_pallas(x2d, w3, b3, *, out_dtype=jnp.bfloat16):
    """Fused QKV projection emitted directly in split layout.

    x2d: (M, K) bf16, w3: (3, K, C) bf16, b3: (3, 1, C) f32 -> (3, M, C)."""
    M, K = x2d.shape
    _, _, C = w3.shape
    tm = M if M <= 256 else 256
    tn = _pick_col_tile(C)
    grid = (pl.cdiv(M, tm), 3, pl.cdiv(C, tn))
    cost = pl.CostEstimate(
        flops=2 * M * K * 3 * C,
        transcendentals=0,
        bytes_accessed=M * K * x2d.dtype.itemsize + 3 * K * C * w3.dtype.itemsize
        + 3 * C * 4 + 3 * M * C * jnp.dtype(out_dtype).itemsize,
    )
    return pl.pallas_call(
        _linear_kernel,
        out_shape=jax.ShapeDtypeStruct((3, M, C), out_dtype),
        grid=grid,
        in_specs=[
            pl.BlockSpec((tm, K), lambda i, s, j: (i, 0)),
            pl.BlockSpec((None, K, tn), lambda i, s, j: (s, 0, j)),
            pl.BlockSpec((None, 1, tn), lambda i, s, j: (s, 0, j)),
        ],
        out_specs=pl.BlockSpec((None, tm, tn), lambda i, s, j: (s, i, j)),
        compiler_params=pltpu.CompilerParams(
            dimension_semantics=("parallel", "parallel", "parallel"),
            vmem_limit_bytes=_VMEM_LIMIT,
        ),
        cost_estimate=cost,
    )(x2d, w3, b3)


# ----------------------------------------------------------------------------
# Attention kernel: one (batch, q-tile) per grid step, heads unrolled inside.
#   q_ref: (tq, C) bf16 (pipelined per tile)     k_ref/v_ref: (T, C) bf16
#   att_ref: (n_head, tq, T) f32 softmax weights (matches PyTorch)
#   o_ref:   (tq, C) context, already in (B, T, C) layout -> lane-dense store
# ----------------------------------------------------------------------------
def _attn_kernel(q_ref, k_ref, v_ref, att_ref, o_ref, *, scale, n_head, d):
    T = k_ref.shape[0]
    tq = q_ref.shape[0]
    qi = pl.program_id(1)

    row = qi * tq + jax.lax.broadcasted_iota(jnp.int32, (tq, T), 0)
    col = jax.lax.broadcasted_iota(jnp.int32, (tq, T), 1)
    causal = col <= row  # lower-triangular keep

    for h in range(n_head):
        # Fold 1/sqrt(d) into the small (tq, d) q tile (T/d fewer multiplies
        # than scaling the (tq, T) score matrix).
        q = q_ref[:, h * d:(h + 1) * d] * scale
        k = k_ref[:, h * d:(h + 1) * d]
        v = v_ref[:, h * d:(h + 1) * d]

        # Contract on the last dim of both operands (no k.T relayout).
        s = jax.lax.dot_general(
            q, k, (((1,), (1,)), ((), ())),
            preferred_element_type=jnp.float32)                      # (tq, T)
        s = jnp.where(causal, s, -jnp.inf)

        m = jnp.max(s, axis=-1, keepdims=True)
        e = jnp.exp(s - m)
        denom = jnp.sum(e, axis=-1, keepdims=True)
        p = e * (1.0 / denom)          # exact reciprocal: rows sum to 1 (f32)

        # Store this head's results immediately -> bounds per-head liveness,
        # no list + concatenate at the end.
        att_ref[h] = p.astype(att_ref.dtype)
        o_ref[:, h * d:(h + 1) * d] = jnp.dot(
            p.astype(v.dtype), v,
            preferred_element_type=jnp.float32).astype(o_ref.dtype)
        # TODO(synk): causal-bounded KV chunking here would skip ~half the
        # masked QK^T / exp / PV work at large T.


def _pick_q_tile(T, C, n_head, att_itemsize, budget):
    """Largest q-tile whose double-buffered blocks fit the VMEM budget."""
    def vmem_bytes(tq):
        q = 2 * tq * C * 2               # bf16 q tile, double-buffered
        kv = 2 * 2 * T * C * 2           # resident k and v slabs
        att = 2 * n_head * tq * T * att_itemsize
        ctx = 2 * tq * C * 2
        return q + kv + att + ctx

    cap = min(T, 512)
    cands = [t for t in range(cap, 0, -1)
             if T % t == 0 and (t % 8 == 0 or t == T)]
    if not cands:
        cands = [t for t in range(cap - cap % 8, 7, -8)] or [T]
    for t in cands:
        if vmem_bytes(t) <= budget:
            return t
    return cands[-1]


def attention_pallas(qkv3, n_head, *, att_dtype=jnp.float32,
                     out_dtype=jnp.bfloat16):
    """qkv3: (3, B, T, C) bf16 -> (att_weights (B,H,T,T), context (B,T,C)).

    Set att_dtype=jnp.bfloat16 to halve the dominant B*H*T^2 HBM writeback
    (helps most on v5e) if exact-f32 attention weights are not required."""
    _, B, T, C = qkv3.shape
    assert C % n_head == 0
    d = C // n_head
    scale = 1.0 / math.sqrt(d)
    tq = _pick_q_tile(T, C, n_head, jnp.dtype(att_dtype).itemsize,
                      _VMEM_BLOCK_BUDGET)

    kernel = functools.partial(_attn_kernel, scale=scale, n_head=n_head, d=d)
    cost = pl.CostEstimate(
        flops=4 * B * n_head * T * T * d,          # q@k^T and p@v
        transcendentals=B * n_head * T * T,        # exp
        bytes_accessed=3 * B * T * C * qkv3.dtype.itemsize
        + B * n_head * T * T * jnp.dtype(att_dtype).itemsize
        + B * T * C * jnp.dtype(out_dtype).itemsize,
    )

    att, y = pl.pallas_call(
        kernel,
        out_shape=(
            jax.ShapeDtypeStruct((B, n_head, T, T), att_dtype),
            jax.ShapeDtypeStruct((B, T, C), out_dtype),
        ),
        grid=(B, pl.cdiv(T, tq)),
        in_specs=[
            # q: pipelined per q-tile; k/v: resident per batch (block index
            # constant across qi -> fetched once per batch).
            pl.BlockSpec((None, None, tq, C), lambda b, qi: (0, b, qi, 0)),
            pl.BlockSpec((None, None, T, C), lambda b, qi: (1, b, 0, 0)),
            pl.BlockSpec((None, None, T, C), lambda b, qi: (2, b, 0, 0)),
        ],
        out_specs=(
            pl.BlockSpec((None, n_head, tq, T), lambda b, qi: (b, 0, qi, 0)),
            pl.BlockSpec((None, tq, C), lambda b, qi: (b, qi, 0)),
        ),
        compiler_params=pltpu.CompilerParams(
            # Batch is the megacore-sharded axis (v7x): each core keeps its
            # own K/V slab residency instead of re-fetching per q-tile.
            dimension_semantics=("parallel", "arbitrary"),
            vmem_limit_bytes=_VMEM_LIMIT,
        ),
        cost_estimate=cost,
    )(qkv3, qkv3, qkv3)
    return att, y


# ----------------------------------------------------------------------------
# Parameter prep (do ONCE, outside jit): bf16 weights + split-QKV layout.
# ----------------------------------------------------------------------------
def prepare_params(params):
    C = params["w_proj"].shape[0]
    w_attn3 = (params["w_attn"].reshape(C, 3, C).transpose(1, 0, 2)
               .astype(jnp.bfloat16))                        # (3, C, C)
    b_attn3 = params["b_attn"].reshape(3, 1, C).astype(jnp.float32)
    w_proj = params["w_proj"].astype(jnp.bfloat16)           # (C, C)
    b_proj = params["b_proj"].reshape(1, C).astype(jnp.float32)
    return dict(w_attn3=w_attn3, b_attn3=b_attn3, w_proj=w_proj, b_proj=b_proj)


# ----------------------------------------------------------------------------
# Full SelfAttention forward.
# ----------------------------------------------------------------------------
def self_attention_forward(x, prep, n_head):
    """x: (B, T, C) f32. Returns (out (B,T,C) f32, att_weights (B,H,T,T) f32)."""
    B, T, C = x.shape
    assert C % n_head == 0
    x_bf16 = x.astype(jnp.bfloat16)

    # c_attn: emitted directly in (3, B, T, C) bf16 layout (no transposes).
    qkv3 = qkv_proj_pallas(
        x_bf16.reshape(B * T, C), prep["w_attn3"], prep["b_attn3"],
        out_dtype=jnp.bfloat16,
    ).reshape(3, B, T, C)

    # Attention: writes context already in (B, T, C) layout (lane dense).
    att_weights, y = attention_pallas(qkv3, n_head)

    # c_proj: (B*T, C) @ (C, C) + b, final output in f32.
    out = linear_pallas(
        y.reshape(B * T, C), prep["w_proj"], prep["b_proj"],
        out_dtype=jnp.float32,
    ).reshape(B, T, C)
    return out, att_weights


def init_params(key, n_embd):
    """Deterministic init matching PyTorch parameter shapes (weights stored as
    (in, out) for x @ W matmuls)."""
    k1, k2, k3, k4 = jax.random.split(key, 4)
    s = 1.0 / math.sqrt(n_embd)
    w_attn = jax.random.uniform(k1, (n_embd, 3 * n_embd), jnp.float32, -s, s)
    b_attn = jax.random.uniform(k2, (3 * n_embd,), jnp.float32, -s, s)
    w_proj = jax.random.uniform(k3, (n_embd, n_embd), jnp.float32, -s, s)
    b_proj = jax.random.uniform(k4, (n_embd,), jnp.float32, -s, s)
    return dict(w_attn=w_attn, b_attn=b_attn, w_proj=w_proj, b_proj=b_proj)


if __name__ == "__main__":
    # Small GPTConfig-like sizes: n_embd=32, n_head=4, seq=8, batch=2.
    n_embd, n_head = 32, 4
    B, T = 2, 8

    key = jax.random.PRNGKey(0)
    kx, kp = jax.random.split(key)
    x = jax.random.normal(kx, (B, T, n_embd), dtype=jnp.float32)
    params = init_params(kp, n_embd)
    prep = prepare_params(params)   # one-time bf16 cast + layout transform

    fwd = jax.jit(functools.partial(self_attention_forward, n_head=n_head))
    out, att = fwd(x, prep)
    jax.block_until_ready((out, att))

    assert out.shape == (B, T, n_embd) and out.dtype == jnp.float32
    assert att.shape == (B, n_head, T, T)
    # Sanity: softmax rows sum to ~1 and non-causal positions are exactly zero.
    assert bool(jnp.all(jnp.abs(att.sum(-1) - 1.0) < 1e-3))
    upper = jnp.triu(jnp.ones((T, T), dtype=bool), k=1)
    assert bool(jnp.all(jnp.where(upper[None, None], att, 0.0) == 0.0))
    print("KERNEL_OK")
</pallas_src>

<mosaic_0001>
module attributes {stable_mosaic.version = 11 : i64} {
  func.func @_linear_kernel(%arg0: i32, %arg1: i32, %arg2: memref<16x32xbf16, #tpu.memory_space<vmem>>, %arg3: memref<32x32xbf16, #tpu.memory_space<vmem>>, %arg4: memref<1x32xf32, #tpu.memory_space<vmem>>, %arg5: memref<16x32xf32, #tpu.memory_space<vmem>>) attributes {dimension_semantics = [#tpu.dimension_semantics<parallel>, #tpu.dimension_semantics<parallel>], iteration_bounds = array<i64: 1, 1>, scalar_prefetch = 0 : i64, scratch_operands = 0 : i64, tpu.core_type = #tpu.core_type<tc>, window_params = [{transform_indices = @transform_0, window_bounds = array<i64: 16, 32>}, {transform_indices = @transform_1, window_bounds = array<i64: 32, 32>}, {transform_indices = @transform_2, window_bounds = array<i64: 1, 32>}, {transform_indices = @transform_3, window_bounds = array<i64: 16, 32>}]} {
    %c0 = arith.constant 0 : index
    %c0_0 = arith.constant 0 : index
    %0 = vector.load %arg2[%c0, %c0_0] : memref<16x32xbf16, #tpu.memory_space<vmem>>, vector<16x32xbf16>
    %c0_1 = arith.constant 0 : index
    %c0_2 = arith.constant 0 : index
    %1 = vector.load %arg3[%c0_1, %c0_2] : memref<32x32xbf16, #tpu.memory_space<vmem>>, vector<32x32xbf16>
    %cst = arith.constant dense<0.000000e+00> : vector<16x32xf32>
    %2 = tpu.matmul %0, %1, %cst {dimension_numbers = #tpu.dot_dimension_numbers<[1], [0], [0], [1], [0, 0, 1, 1], [], []>} : vector<16x32xbf16>, vector<32x32xbf16>, vector<16x32xf32> -> vector<16x32xf32>
    %c0_3 = arith.constant 0 : index
    %c0_4 = arith.constant 0 : index
    %3 = vector.load %arg4[%c0_3, %c0_4] : memref<1x32xf32, #tpu.memory_space<vmem>>, vector<1x32xf32>
    %4 = vector.broadcast %3 : vector<1x32xf32> to vector<16x32xf32>
    %5 = arith.addf %2, %4 : vector<16x32xf32>
    %c0_5 = arith.constant 0 : index
    %c0_6 = arith.constant 0 : index
    %6 = vector.load %arg5[%c0_5, %c0_6] : memref<16x32xf32, #tpu.memory_space<vmem>>, vector<16x32xf32>
    tpu.vector_store %arg5[%c0_5, %c0_6], %5 {strides = array<i32>} : memref<16x32xf32, #tpu.memory_space<vmem>>, vector<16x32xf32>,
    return
  }
  func.func @transform_0(%arg0: i32, %arg1: i32) -> (i32, i32) {
    %c0_i32 = arith.constant 0 : i32
    %c0_i32_0 = arith.constant 0 : i32
    return %arg0, %c0_i32 : i32, i32
  }
  func.func @transform_1(%arg0: i32, %arg1: i32) -> (i32, i32) {
    %c0_i32 = arith.constant 0 : i32
    %c0_i32_0 = arith.constant 0 : i32
    return %c0_i32, %arg1 : i32, i32
  }
  func.func @transform_2(%arg0: i32, %arg1: i32) -> (i32, i32) {
    %c0_i32 = arith.constant 0 : i32
    %c0_i32_0 = arith.constant 0 : i32
    return %c0_i32, %arg1 : i32, i32
  }
  func.func @transform_3(%arg0: i32, %arg1: i32) -> (i32, i32) {
    %c0_i32 = arith.constant 0 : i32
    return %arg0, %arg1 : i32, i32
  }
}

module attributes {stable_mosaic.version = 11 : i64} {
  func.func @_linear_kernel(%arg0: i32, %arg1: i32, %arg2: i32, %arg3: memref<16x32xbf16, #tpu.memory_space<vmem>>, %arg4: memref<1x32x32xbf16, #tpu.memory_space<vmem>>, %arg5: memref<1x1x32xf32, #tpu.memory_space<vmem>>, %arg6: memref<1x16x32xbf16, #tpu.memory_space<vmem>>) attributes {dimension_semantics = [#tpu.dimension_semantics<parallel>, #tpu.dimension_semantics<parallel>, #tpu.dimension_semantics<parallel>], iteration_bounds = array<i64: 1, 3, 1>, scalar_prefetch = 0 : i64, scratch_operands = 0 : i64, tpu.core_type = #tpu.core_type<tc>, window_params = [{transform_indices = @transform_0, window_bounds = array<i64: 16, 32>}, {transform_indices = @transform_1, window_bounds = array<i64: 1, 32, 32>}, {transform_indices = @transform_2, window_bounds = array<i64: 1, 1, 32>}, {transform_indices = @transform_3, window_bounds = array<i64: 1, 16, 32>}]} {
    %c0 = arith.constant 0 : index
    %c0_0 = arith.constant 0 : index
    %0 = vector.load %arg3[%c0, %c0_0] : memref<16x32xbf16, #tpu.memory_space<vmem>>, vector<16x32xbf16>
    %c0_1 = arith.constant 0 : index
    %c0_2 = arith.constant 0 : index
    %c0_3 = arith.constant 0 : index
    %1 = vector.load %arg4[%c0_1, %c0_2, %c0_3] : memref<1x32x32xbf16, #tpu.memory_space<vmem>>, vector<1x32x32xbf16>
    %2 = vector.shape_cast %1 : vector<1x32x32xbf16> to vector<32x32xbf16>
    %cst = arith.constant dense<0.000000e+00> : vector<16x32xf32>
    %3 = tpu.matmul %0, %2, %cst {dimension_numbers = #tpu.dot_dimension_numbers<[1], [0], [0], [1], [0, 0, 1, 1], [], []>} : vector<16x32xbf16>, vector<32x32xbf16>, vector<16x32xf32> -> vector<16x32xf32>
    %c0_4 = arith.constant 0 : index
    %c0_5 = arith.constant 0 : index
    %c0_6 = arith.constant 0 : index
    %4 = vector.load %arg5[%c0_4, %c0_5, %c0_6] : memref<1x1x32xf32, #tpu.memory_space<vmem>>, vector<1x1x32xf32>
    %5 = vector.shape_cast %4 : vector<1x1x32xf32> to vector<1x32xf32>
    %6 = vector.broadcast %5 : vector<1x32xf32> to vector<16x32xf32>
    %7 = arith.addf %3, %6 : vector<16x32xf32>
    %8 = arith.truncf %7 : vector<16x32xf32> to vector<16x32xbf16>
    %c0_7 = arith.constant 0 : index
    %c0_8 = arith.constant 0 : index
    %c0_9 = arith.constant 0 : index
    %9 = vector.load %arg6[%c0_7, %c0_8, %c0_9] : memref<1x16x32xbf16, #tpu.memory_space<vmem>>, vector<1x16x32xbf16>
    %10 = vector.shape_cast %9 : vector<1x16x32xbf16> to vector<16x32xbf16>
    %11 = vector.shape_cast %8 : vector<16x32xbf16> to vector<1x16x32xbf16>
    tpu.vector_store %arg6[%c0_7, %c0_8, %c0_9], %11 {strides = array<i32>} : memref<1x16x32xbf16, #tpu.memory_space<vmem>>, vector<1x16x32xbf16>,
    return
  }
  func.func @transform_0(%arg0: i32, %arg1: i32, %arg2: i32) -> (i32, i32) {
    %c0_i32 = arith.constant 0 : i32
    %c0_i32_0 = arith.constant 0 : i32
    return %arg0, %c0_i32 : i32, i32
  }
  func.func @transform_1(%arg0: i32, %arg1: i32, %arg2: i32) -> (i32, i32, i32) {
    %c0_i32 = arith.constant 0 : i32
    %c0_i32_0 = arith.constant 0 : i32
    return %arg1, %c0_i32, %arg2 : i32, i32, i32
  }
  func.func @transform_2(%arg0: i32, %arg1: i32, %arg2: i32) -> (i32, i32, i32) {
    %c0_i32 = arith.constant 0 : i32
    %c0_i32_0 = arith.constant 0 : i32
    return %arg1, %c0_i32, %arg2 : i32, i32, i32
  }
  func.func @transform_3(%arg0: i32, %arg1: i32, %arg2: i32) -> (i32, i32, i32) {
    %c0_i32 = arith.constant 0 : i32
    return %arg1, %arg0, %arg2 : i32, i32, i32
  }
}

module attributes {stable_mosaic.version = 11 : i64} {
  func.func @_attn_kernel(%arg0: i32, %arg1: i32, %arg2: memref<1x1x8x32xbf16, #tpu.memory_space<vmem>>, %arg3: memref<1x1x8x32xbf16, #tpu.memory_space<vmem>>, %arg4: memref<1x1x8x32xbf16, #tpu.memory_space<vmem>>, %arg5: memref<1x4x8x8xf32, #tpu.memory_space<vmem>>, %arg6: memref<1x8x32xbf16, #tpu.memory_space<vmem>>) attributes {dimension_semantics = [#tpu.dimension_semantics<parallel>, #tpu.dimension_semantics<arbitrary>], iteration_bounds = array<i64: 2, 1>, scalar_prefetch = 0 : i64, scratch_operands = 0 : i64, tpu.core_type = #tpu.core_type<tc>, window_params = [{transform_indices = @transform_0, window_bounds = array<i64: 1, 1, 8, 32>}, {transform_indices = @transform_1, window_bounds = array<i64: 1, 1, 8, 32>}, {transform_indices = @transform_2, window_bounds = array<i64: 1, 1, 8, 32>}, {transform_indices = @transform_3, window_bounds = array<i64: 1, 4, 8, 8>}, {transform_indices = @transform_4, window_bounds = array<i64: 1, 8, 32>}]} {
    %c8_i32 = arith.constant 8 : i32
    %0 = arith.muli %arg1, %c8_i32 : i32
    %1 = tpu.iota {dimensions = array<i32: 0>} : vector<8x8xi32>
    %2 = vector.broadcast %0 : i32 to vector<8x8xi32>
    %3 = arith.addi %2, %1 : vector<8x8xi32>
    %4 = tpu.iota {dimensions = array<i32: 1>} : vector<8x8xi32>
    %5 = arith.cmpi sle, %4, %3 : vector<8x8xi32>
    %c0 = arith.constant 0 : index
    %c0_0 = arith.constant 0 : index
    %c0_1 = arith.constant 0 : index
    %c0_2 = arith.constant 0 : index
    %6 = vector.load %arg2[%c0, %c0_0, %c0_1, %c0_2] : memref<1x1x8x32xbf16, #tpu.memory_space<vmem>>, vector<1x1x8x8xbf16>
    %7 = vector.shape_cast %6 : vector<1x1x8x8xbf16> to vector<8x8xbf16>
    %cst = arith.constant 3.535160e-01 : bf16
    %8 = vector.broadcast %cst : bf16 to vector<8x8xbf16>
    %9 = arith.mulf %7, %8 : vector<8x8xbf16>
    %c0_3 = arith.constant 0 : index
    %c0_4 = arith.constant 0 : index
    %c0_5 = arith.constant 0 : index
    %c0_6 = arith.constant 0 : index
    %10 = vector.load %arg3[%c0_3, %c0_4, %c0_5, %c0_6] : memref<1x1x8x32xbf16, #tpu.memory_space<vmem>>, vector<1x1x8x8xbf16>
    %11 = vector.shape_cast %10 : vector<1x1x8x8xbf16> to vector<8x8xbf16>
    %c0_7 = arith.constant 0 : index
    %c0_8 = arith.constant 0 : index
    %c0_9 = arith.constant 0 : index
    %c0_10 = arith.constant 0 : index
    %12 = vector.load %arg4[%c0_7, %c0_8, %c0_9, %c0_10] : memref<1x1x8x32xbf16, #tpu.memory_space<vmem>>, vector<1x1x8x8xbf16>
    %13 = vector.shape_cast %12 : vector<1x1x8x8xbf16> to vector<8x8xbf16>
    %cst_11 = arith.constant dense<0.000000e+00> : vector<8x8xf32>
    %14 = tpu.matmul %9, %11, %cst_11 {dimension_numbers = #tpu.dot_dimension_numbers<[1], [1], [0], [0], [0, 0, 1, 0], [], []>} : vector<8x8xbf16>, vector<8x8xbf16>, vector<8x8xf32> -> vector<8x8xf32>
    %cst_12 = arith.constant 0xFF800000 : f32
    %15 = vector.broadcast %cst_12 : f32 to vector<8x8xf32>
    %16 = arith.select %5, %14, %15 : vector<8x8xi1>, vector<8x8xf32>
    %cst_13 = arith.constant dense<0xFF800000> : vector<8xf32>
    %17 = vector.multi_reduction <maximumf>, %16, %cst_13 [1] : vector<8x8xf32> to vector<8xf32>
    %18 = vector.shape_cast %17 : vector<8xf32> to vector<8x1xf32>
    %19 = vector.broadcast %18 : vector<8x1xf32> to vector<8x8xf32>
    %20 = arith.subf %16, %19 : vector<8x8xf32>
    %21 = math.exp %20 : vector<8x8xf32>
    %cst_14 = arith.constant dense<0.000000e+00> : vector<8xf32>
    %22 = vector.multi_reduction <add>, %21, %cst_14 [1] : vector<8x8xf32> to vector<8xf32>
    %23 = vector.shape_cast %22 : vector<8xf32> to vector<8x1xf32>
    %cst_15 = arith.constant 1.000000e+00 : f32
    %24 = vector.broadcast %cst_15 : f32 to vector<8x1xf32>
    %25 = arith.divf %24, %23 : vector<8x1xf32>
    %26 = vector.broadcast %25 : vector<8x1xf32> to vector<8x8xf32>
    %27 = arith.mulf %21, %26 : vector<8x8xf32>
    %c0_16 = arith.constant 0 : index
    %c0_17 = arith.constant 0 : index
    %c0_18 = arith.constant 0 : index
    %c0_19 = arith.constant 0 : index
    %28 = vector.load %arg5[%c0_16, %c0_17, %c0_18, %c0_19] : memref<1x4x8x8xf32, #tpu.memory_space<vmem>>, vector<1x1x8x8xf32>
    %29 = vector.shape_cast %28 : vector<1x1x8x8xf32> to vector<8x8xf32>
    %30 = vector.shape_cast %27 : vector<8x8xf32> to vector<1x1x8x8xf32>
    tpu.vector_store %arg5[%c0_16, %c0_17, %c0_18, %c0_19], %30 {strides = array<i32>} : memref<1x4x8x8xf32, #tpu.memory_space<vmem>>, vector<1x1x8x8xf32>,
    %31 = arith.truncf %27 : vector<8x8xf32> to vector<8x8xbf16>
    %cst_20 = arith.constant dense<0.000000e+00> : vector<8x8xf32>
    %32 = tpu.matmul %31, %13, %cst_20 {dimension_numbers = #tpu.dot_dimension_numbers<[1], [0], [0], [1], [0, 0, 1, 1], [], []>} : vector<8x8xbf16>, vector<8x8xbf16>, vector<8x8xf32> -> vector<8x8xf32>
    %33 = arith.truncf %32 : vector<8x8xf32> to vector<8x8xbf16>
    %c0_21 = arith.constant 0 : index
    %c0_22 = arith.constant 0 : index
    %c0_23 = arith.constant 0 : index
    %34 = vector.load %arg6[%c0_21, %c0_22, %c0_23] : memref<1x8x32xbf16, #tpu.memory_space<vmem>>, vector<1x8x8xbf16>
    %35 = vector.shape_cast %34 : vector<1x8x8xbf16> to vector<8x8xbf16>
    %36 = vector.shape_cast %33 : vector<8x8xbf16> to vector<1x8x8xbf16>
    tpu.vector_store %arg6[%c0_21, %c0_22, %c0_23], %36 {strides = array<i32>} : memref<1x8x32xbf16, #tpu.memory_space<vmem>>, vector<1x8x8xbf16>,
    %c0_24 = arith.constant 0 : index
    %c0_25 = arith.constant 0 : index
    %c0_26 = arith.constant 0 : index
    %c8 = arith.constant 8 : index
    %37 = vector.load %arg2[%c0_24, %c0_25, %c0_26, %c8] : memref<1x1x8x32xbf16, #tpu.memory_space<vmem>>, vector<1x1x8x8xbf16>
    %38 = vector.shape_cast %37 : vector<1x1x8x8xbf16> to vector<8x8xbf16>
    %cst_27 = arith.constant 3.535160e-01 : bf16
    %39 = vector.broadcast %cst_27 : bf16 to vector<8x8xbf16>
    %40 = arith.mulf %38, %39 : vector<8x8xbf16>
    %c0_28 = arith.constant 0 : index
    %c0_29 = arith.constant 0 : index
    %c0_30 = arith.constant 0 : index
    %c8_31 = arith.constant 8 : index
    %41 = vector.load %arg3[%c0_28, %c0_29, %c0_30, %c8_31] : memref<1x1x8x32xbf16, #tpu.memory_space<vmem>>, vector<1x1x8x8xbf16>
    %42 = vector.shape_cast %41 : vector<1x1x8x8xbf16> to vector<8x8xbf16>
    %c0_32 = arith.constant 0 : index
    %c0_33 = arith.constant 0 : index
    %c0_34 = arith.constant 0 : index
    %c8_35 = arith.constant 8 : index
    %43 = vector.load %arg4[%c0_32, %c0_33, %c0_34, %c8_35] : memref<1x1x8x32xbf16, #tpu.memory_space<vmem>>, vector<1x1x8x8xbf16>
    %44 = vector.shape_cast %43 : vector<1x1x8x8xbf16> to vector<8x8xbf16>
    %cst_36 = arith.constant dense<0.000000e+00> : vector<8x8xf32>
    %45 = tpu.matmul %40, %42, %cst_36 {dimension_numbers = #tpu.dot_dimension_numbers<[1], [1], [0], [0], [0, 0, 1, 0], [], []>} : vector<8x8xbf16>, vector<8x8xbf16>, vector<8x8xf32> -> vector<8x8xf32>
    %cst_37 = arith.constant 0xFF800000 : f32
    %46 = vector.broadcast %cst_37 : f32 to vector<8x8xf32>
    %47 = arith.select %5, %45, %46 : vector<8x8xi1>, vector<8x8xf32>
    %cst_38 = arith.constant dense<0xFF800000> : vector<8xf32>
    %48 = vector.multi_reduction <maximumf>, %47, %cst_38 [1] : vector<8x8xf32> to vector<8xf32>
    %49 = vector.shape_cast %48 : vector<8xf32> to vector<8x1xf32>
    %50 = vector.broadcast %49 : vector<8x1xf32> to vector<8x8xf32>
    %51 = arith.subf %47, %50 : vector<8x8xf32>
    %52 = math.exp %51 : vector<8x8xf32>
    %cst_39 = arith.constant dense<0.000000e+00> : vector<8xf32>
    %53 = vector.multi_reduction <add>, %52, %cst_39 [1] : vector<8x8xf32> to vector<8xf32>
    %54 = vector.shape_cast %53 : vector<8xf32> to vector<8x1xf32>
    %cst_40 = arith.constant 1.000000e+00 : f32
    %55 = vector.broadcast %cst_40 : f32 to vector<8x1xf32>
    %56 = arith.divf %55, %54 : vector<8x1xf32>
    %57 = vector.broadcast %56 : vector<8x1xf32> to vector<8x8xf32>
    %58 = arith.mulf %52, %57 : vector<8x8xf32>
    %c0_41 = arith.constant 0 : index
    %c1 = arith.constant 1 : index
    %c0_42 = arith.constant 0 : index
    %c0_43 = arith.constant 0 : index
    %59 = vector.load %arg5[%c0_41, %c1, %c0_42, %c0_43] : memref<1x4x8x8xf32, #tpu.memory_space<vmem>>, vector<1x1x8x8xf32>
    %60 = vector.shape_cast %59 : vector<1x1x8x8xf32> to vector<8x8xf32>
    %61 = vector.shape_cast %58 : vector<8x8xf32> to vector<1x1x8x8xf32>
    tpu.vector_store %arg5[%c0_41, %c1, %c0_42, %c0_43], %61 {strides = array<i32>} : memref<1x4x8x8xf32, #tpu.memory_space<vmem>>, vector<1x1x8x8xf32>,
    %62 = arith.truncf %58 : vector<8x8xf32> to vector<8x8xbf16>
    %cst_44 = arith.constant dense<0.000000e+00> : vector<8x8xf32>
    %63 = tpu.matmul %62, %44, %cst_44 {dimension_numbers = #tpu.dot_dimension_numbers<[1], [0], [0], [1], [0, 0, 1, 1], [], []>} : vector<8x8xbf16>, vector<8x8xbf16>, vector<8x8xf32> -> vector<8x8xf32>
    %64 = arith.truncf %63 : vector<8x8xf32> to vector<8x8xbf16>
    %c0_45 = arith.constant 0 : index
    %c0_46 = arith.constant 0 : index
    %c8_47 = arith.constant 8 : index
    %65 = vector.load %arg6[%c0_45, %c0_46, %c8_47] : memref<1x8x32xbf16, #tpu.memory_space<vmem>>, vector<1x8x8xbf16>
    %66 = vector.shape_cast %65 : vector<1x8x8xbf16> to vector<8x8xbf16>
    %67 = vector.shape_cast %64 : vector<8x8xbf16> to vector<1x8x8xbf16>
    tpu.vector_store %arg6[%c0_45, %c0_46, %c8_47], %67 {strides = array<i32>} : memref<1x8x32xbf16, #tpu.memory_space<vmem>>, vector<1x8x8xbf16>,
    %c0_48 = arith.constant 0 : index
    %c0_49 = arith.constant 0 : index
    %c0_50 = arith.constant 0 : index
    %c16 = arith.constant 16 : index
    %68 = vector.load %arg2[%c0_48, %c0_49, %c0_50, %c16] : memref<1x1x8x32xbf16, #tpu.memory_space<vmem>>, vector<1x1x8x8xbf16>
    %69 = vector.shape_cast %68 : vector<1x1x8x8xbf16> to vector<8x8xbf16>
    %cst_51 = arith.constant 3.535160e-01 : bf16
    %70 = vector.broadcast %cst_51 : bf16 to vector<8x8xbf16>
    %71 = arith.mulf %69, %70 : vector<8x8xbf16>
    %c0_52 = arith.constant 0 : index
    %c0_53 = arith.constant 0 : index
    %c0_54 = arith.constant 0 : index
    %c16_55 = arith.constant 16 : index
    %72 = vector.load %arg3[%c0_52, %c0_53, %c0_54, %c16_55] : memref<1x1x8x32xbf16, #tpu.memory_space<vmem>>, vector<1x1x8x8xbf16>
    %73 = vector.shape_cast %72 : vector<1x1x8x8xbf16> to vector<8x8xbf16>
    %c0_56 = arith.constant 0 : index
    %c0_57 = arith.constant 0 : index
    %c0_58 = arith.constant 0 : index
    %c16_59 = arith.constant 16 : index
    %74 = vector.load %arg4[%c0_56, %c0_57, %c0_58, %c16_59] : memref<1x1x8x32xbf16, #tpu.memory_space<vmem>>, vector<1x1x8x8xbf16>
    %75 = vector.shape_cast %74 : vector<1x1x8x8xbf16> to vector<8x8xbf16>
    %cst_60 = arith.constant dense<0.000000e+00> : vector<8x8xf32>
    %76 = tpu.matmul %71, %73, %cst_60 {dimension_numbers = #tpu.dot_dimension_numbers<[1], [1], [0], [0], [0, 0, 1, 0], [], []>} : vector<8x8xbf16>, vector<8x8xbf16>, vector<8x8xf32> -> vector<8x8xf32>
    %cst_61 = arith.constant 0xFF800000 : f32
    %77 = vector.broadcast %cst_61 : f32 to vector<8x8xf32>
    %78 = arith.select %5, %76, %77 : vector<8x8xi1>, vector<8x8xf32>
    %cst_62 = arith.constant dense<0xFF800000> : vector<8xf32>
    %79 = vector.multi_reduction <maximumf>, %78, %cst_62 [1] : vector<8x8xf32> to vector<8xf32>
    %80 = vector.shape_cast %79 : vector<8xf32> to vector<8x1xf32>
    %81 = vector.broadcast %80 : vector<8x1xf32> to vector<8x8xf32>
    %82 = arith.subf %78, %81 : vector<8x8xf32>
    %83 = math.exp %82 : vector<8x8xf32>
    %cst_63 = arith.constant dense<0.000000e+00> : vector<8xf32>
    %84 = vector.multi_reduction <add>, %83, %cst_63 [1] : vector<8x8xf32> to vector<8xf32>
    %85 = vector.shape_cast %84 : vector<8xf32> to vector<8x1xf32>
    %cst_64 = arith.constant 1.000000e+00 : f32
    %86 = vector.broadcast %cst_64 : f32 to vector<8x1xf32>
    %87 = arith.divf %86, %85 : vector<8x1xf32>
    %88 = vector.broadcast %87 : vector<8x1xf32> to vector<8x8xf32>
    %89 = arith.mulf %83, %88 : vector<8x8xf32>
    %c0_65 = arith.constant 0 : index
    %c2 = arith.constant 2 : index
    %c0_66 = arith.constant 0 : index
    %c0_67 = arith.constant 0 : index
    %90 = vector.load %arg5[%c0_65, %c2, %c0_66, %c0_67] : memref<1x4x8x8xf32, #tpu.memory_space<vmem>>, vector<1x1x8x8xf32>
    %91 = vector.shape_cast %90 : vector<1x1x8x8xf32> to vector<8x8xf32>
    %92 = vector.shape_cast %89 : vector<8x8xf32> to vector<1x1x8x8xf32>
    tpu.vector_store %arg5[%c0_65, %c2, %c0_66, %c0_67], %92 {strides = array<i32>} : memref<1x4x8x8xf32, #tpu.memory_space<vmem>>, vector<1x1x8x8xf32>,
    %93 = arith.truncf %89 : vector<8x8xf32> to vector<8x8xbf16>
    %cst_68 = arith.constant dense<0.000000e+00> : vector<8x8xf32>
    %94 = tpu.matmul %93, %75, %cst_68 {dimension_numbers = #tpu.dot_dimension_numbers<[1], [0], [0], [1], [0, 0, 1, 1], [], []>} : vector<8x8xbf16>, vector<8x8xbf16>, vector<8x8xf32> -> vector<8x8xf32>
    %95 = arith.truncf %94 : vector<8x8xf32> to vector<8x8xbf16>
    %c0_69 = arith.constant 0 : index
    %c0_70 = arith.constant 0 : index
    %c16_71 = arith.constant 16 : index
    %96 = vector.load %arg6[%c0_69, %c0_70, %c16_71] : memref<1x8x32xbf16, #tpu.memory_space<vmem>>, vector<1x8x8xbf16>
    %97 = vector.shape_cast %96 : vector<1x8x8xbf16> to vector<8x8xbf16>
    %98 = vector.shape_cast %95 : vector<8x8xbf16> to vector<1x8x8xbf16>
    tpu.vector_store %arg6[%c0_69, %c0_70, %c16_71], %98 {strides = array<i32>} : memref<1x8x32xbf16, #tpu.memory_space<vmem>>, vector<1x8x8xbf16>,
    %c0_72 = arith.constant 0 : index
    %c0_73 = arith.constant 0 : index
    %c0_74 = arith.constant 0 : index
    %c24 = arith.constant 24 : index
    %99 = vector.load %arg2[%c0_72, %c0_73, %c0_74, %c24] : memref<1x1x8x32xbf16, #tpu.memory_space<vmem>>, vector<1x1x8x8xbf16>
    %100 = vector.shape_cast %99 : vector<1x1x8x8xbf16> to vector<8x8xbf16>
    %cst_75 = arith.constant 3.535160e-01 : bf16
    %101 = vector.broadcast %cst_75 : bf16 to vector<8x8xbf16>
    %102 = arith.mulf %100, %101 : vector<8x8xbf16>
    %c0_76 = arith.constant 0 : index
    %c0_77 = arith.constant 0 : index
    %c0_78 = arith.constant 0 : index
    %c24_79 = arith.constant 24 : index
    %103 = vector.load %arg3[%c0_76, %c0_77, %c0_78, %c24_79] : memref<1x1x8x32xbf16, #tpu.memory_space<vmem>>, vector<1x1x8x8xbf16>
    %104 = vector.shape_cast %103 : vector<1x1x8x8xbf16> to vector<8x8xbf16>
    %c0_80 = arith.constant 0 : index
    %c0_81 = arith.constant 0 : index
    %c0_82 = arith.constant 0 : index
    %c24_83 = arith.constant 24 : index
    %105 = vector.load %arg4[%c0_80, %c0_81, %c0_82, %c24_83] : memref<1x1x8x32xbf16, #tpu.memory_space<vmem>>, vector<1x1x8x8xbf16>
    %106 = vector.shape_cast %105 : vector<1x1x8x8xbf16> to vector<8x8xbf16>
    %cst_84 = arith.constant dense<0.000000e+00> : vector<8x8xf32>
    %107 = tpu.matmul %102, %104, %cst_84 {dimension_numbers = #tpu.dot_dimension_numbers<[1], [1], [0], [0], [0, 0, 1, 0], [], []>} : vector<8x8xbf16>, vector<8x8xbf16>, vector<8x8xf32> -> vector<8x8xf32>
    %cst_85 = arith.constant 0xFF800000 : f32
    %108 = vector.broadcast %cst_85 : f32 to vector<8x8xf32>
    %109 = arith.select %5, %107, %108 : vector<8x8xi1>, vector<8x8xf32>
    %cst_86 = arith.constant dense<0xFF800000> : vector<8xf32>
    %110 = vector.multi_reduction <maximumf>, %109, %cst_86 [1] : vector<8x8xf32> to vector<8xf32>
    %111 = vector.shape_cast %110 : vector<8xf32> to vector<8x1xf32>
    %112 = vector.broadcast %111 : vector<8x1xf32> to vector<8x8xf32>
    %113 = arith.subf %109, %112 : vector<8x8xf32>
    %114 = math.exp %113 : vector<8x8xf32>
    %cst_87 = arith.constant dense<0.000000e+00> : vector<8xf32>
    %115 = vector.multi_reduction <add>, %114, %cst_87 [1] : vector<8x8xf32> to vector<8xf32>
    %116 = vector.shape_cast %115 : vector<8xf32> to vector<8x1xf32>
    %cst_88 = arith.constant 1.000000e+00 : f32
    %117 = vector.broadcast %cst_88 : f32 to vector<8x1xf32>
    %118 = arith.divf %117, %116 : vector<8x1xf32>
    %119 = vector.broadcast %118 : vector<8x1xf32> to vector<8x8xf32>
    %120 = arith.mulf %114, %119 : vector<8x8xf32>
    %c0_89 = arith.constant 0 : index
    %c3 = arith.constant 3 : index
    %c0_90 = arith.constant 0 : index
    %c0_91 = arith.constant 0 : index
    %121 = vector.load %arg5[%c0_89, %c3, %c0_90, %c0_91] : memref<1x4x8x8xf32, #tpu.memory_space<vmem>>, vector<1x1x8x8xf32>
    %122 = vector.shape_cast %121 : vector<1x1x8x8xf32> to vector<8x8xf32>
    %123 = vector.shape_cast %120 : vector<8x8xf32> to vector<1x1x8x8xf32>
    tpu.vector_store %arg5[%c0_89, %c3, %c0_90, %c0_91], %123 {strides = array<i32>} : memref<1x4x8x8xf32, #tpu.memory_space<vmem>>, vector<1x1x8x8xf32>,
    %124 = arith.truncf %120 : vector<8x8xf32> to vector<8x8xbf16>
    %cst_92 = arith.constant dense<0.000000e+00> : vector<8x8xf32>
    %125 = tpu.matmul %124, %106, %cst_92 {dimension_numbers = #tpu.dot_dimension_numbers<[1], [0], [0], [1], [0, 0, 1, 1], [], []>} : vector<8x8xbf16>, vector<8x8xbf16>, vector<8x8xf32> -> vector<8x8xf32>
    %126 = arith.truncf %125 : vector<8x8xf32> to vector<8x8xbf16>
    %c0_93 = arith.constant 0 : index
    %c0_94 = arith.constant 0 : index
    %c24_95 = arith.constant 24 : index
    %127 = vector.load %arg6[%c0_93, %c0_94, %c24_95] : memref<1x8x32xbf16, #tpu.memory_space<vmem>>, vector<1x8x8xbf16>
    %128 = vector.shape_cast %127 : vector<1x8x8xbf16> to vector<8x8xbf16>
    %129 = vector.shape_cast %126 : vector<8x8xbf16> to vector<1x8x8xbf16>
    tpu.vector_store %arg6[%c0_93, %c0_94, %c24_95], %129 {strides = array<i32>} : memref<1x8x32xbf16, #tpu.memory_space<vmem>>, vector<1x8x8xbf16>,
    return
  }
  func.func @transform_0(%arg0: i32, %arg1: i32) -> (i32, i32, i32, i32) {
    %c0_i32 = arith.constant 0 : i32
    %c0_i32_0 = arith.constant 0 : i32
    %c0_i32_1 = arith.constant 0 : i32
    return %c0_i32, %arg0, %arg1, %c0_i32_0 : i32, i32, i32, i32
  }
  func.func @transform_1(%arg0: i32, %arg1: i32) -> (i32, i32, i32, i32) {
    %c1_i32 = arith.constant 1 : i32
    %c0_i32 = arith.constant 0 : i32
    %c0_i32_0 = arith.constant 0 : i32
    %c0_i32_1 = arith.constant 0 : i32
    return %c1_i32, %arg0, %c0_i32, %c0_i32_0 : i32, i32, i32, i32
  }
  func.func @transform_2(%arg0: i32, %arg1: i32) -> (i32, i32, i32, i32) {
    %c2_i32 = arith.constant 2 : i32
    %c0_i32 = arith.constant 0 : i32
    %c0_i32_0 = arith.constant 0 : i32
    %c0_i32_1 = arith.constant 0 : i32
    return %c2_i32, %arg0, %c0_i32, %c0_i32_0 : i32, i32, i32, i32
  }
  func.func @transform_3(%arg0: i32, %arg1: i32) -> (i32, i32, i32, i32) {
    %c0_i32 = arith.constant 0 : i32
    %c0_i32_0 = arith.constant 0 : i32
    %c0_i32_1 = arith.constant 0 : i32
    return %arg0, %c0_i32, %arg1, %c0_i32_0 : i32, i32, i32, i32
  }
  func.func @transform_4(%arg0: i32, %arg1: i32) -> (i32, i32, i32) {
    %c0_i32 = arith.constant 0 : i32
    %c0_i32_0 = arith.constant 0 : i32
    return %arg0, %arg1, %c0_i32 : i32, i32, i32
  }
}

</mosaic_0001>

<bundles_post_ra>
// kernel: self_attention_forward.5
= control target key start
LH: loop header
LB: loop body
LE: loop exit
PB: predicated region body
PF: predicated region fallthrough
CT: control target
= control target key end

     0   :  { %v157_v1 = vmov 0.0   ;;  %vm158_vm0 = vmmov 0   ;;  %s206_s0 = inlined_call_operand.vmem [shape: bf16[16,32], index: 0, kind: input, shape index: {}]   ;;  %s207_s1 = inlined_call_operand.vmem [shape: bf16[32,32], index: 1, kind: input, shape index: {}]   ;;  %s208_s2 = inlined_call_operand.vmem [shape: f32[1,32], index: 2, kind: input, shape index: {}]   ;;  %s209_s3 = inlined_call_operand.hbm [shape: f32[16,32], index: 3, kind: output, shape index: {}]  }
   0x1   :  { %v130_v0 = vld [vmem:[%s207_s1] sm:$0xff]   ;;  %117 = vmatprep.subr.bf16.mxu0 %v157_v1  ;;  %v131_v2 = vld [vmem:[%s207_s1 + $0x8] sm:$0xff]   ;;  %121 = vmatprep.mubr.msk.bf16.mxu0 %vm158_vm0, %v157_v1 }
   0x2   :  { %118 = vmatpush3.bf16.msra.mxu0 %v130_v0 }
   0x3   :  { %119 = vmatprep.subr.bf16.mxu0 %v157_v1 }
   0x4   :  { %8 = vsyncpa [#allocation3], 0  ;;  %v132_v3 = vld [vmem:[%s206_s0] sm:$0xff]   ;;  %vm46_vm1 = vcmask 261120   ;;  %s159_s20 = smov [#allocation2]  }
   0x5   :  { %v109_v4 = vld [vmem:[%s208_s2] ss:$0 sm:$0xff]  ;;  %s98_s21 = sshll.u32 %s159_s20, 4  ;;  %s99_s21 = int_to_ptr.vmem [resolvable:$true] %s98_s21 }
   0x6   :  { %120 = vmatpush3.bf16.msra.mxu0 %v131_v2  ;;  %s133_s1 = scalar_lea.vmem %s99_s21, 256  ;;  %p138_p1 = scmp.lt.s32.totalorder %s99_s21, %s99_s21 }
   0x7   :  { %p134_p0 = scmp.ne.s32.totalorder %s99_s21, %s133_s1  ;;  %p139_p2 = scmp.lt.s32.totalorder %s133_s1, %s133_s1 }
   0x9   :  { %122 = vmatmul.mubr.msk.bf16.vlgmr.msra.gmra.mrb[0].mxu0 %vm46_vm1, %v132_v3  ;;  %p140_p3 = por %p139_p2, %p138_p1 }
   0xb   :  { %p141_p4 = pnand %p140_p3, %p134_p0 }
  0xdc   :  { %v84_v5 = vpop.f32.mrb[0].mxu0 }
  0xdd   :  { %v85_v6 = vadd.f32 %v109_v4, %v84_v5  ;;  %v123_v7 = vpop.f32.mrb[1].mxu0 }
  0xde   :  { %v87_v8 = vpop.f32.mrb[2].mxu0 }
  0xdf   :  { %91 = vst.msk [vmem:[#allocation2] sm:$0xff] %vm46_vm1, %v85_v6  ;;  %v88_v9 = vadd.f32 %v109_v4, %v87_v8  ;;  %v124_v10 = vpop.f32.mrb[3].mxu0 }
  0xe1   :  { %92 = vst.msk [vmem:[#allocation2 + $0x8] sm:$0xff] %vm46_vm1, %v88_v9 }
  0xe2   :  { %144 = shalt.err (!%p141_p4)
}
  0xe3   :  { %s145_s22 = scalar_lea.hbm %s209_s3, 256 }
  0xe4   :  { %p146_p5 = scmp.ne.s32.totalorder %s209_s3, %s145_s22  ;;  %p149_p6 = scmp.lt.u32.totalorder %s145_s22, %s209_s3 }
  0xe6   :  { %p151_p7 = pnand %p149_p6, %p146_p5 }
  0xe8   :  { %154 = shalt.err (!%p151_p7)
}
  0xe9   :  { %s160_s27 = smov 128   ;;  %s161_s28 = smov 8  }
  0xea   :  { %104 = dma.vmem_to_hbm [thread:$0]  %s99_s21, 256, %s209_s3, [#allocation3], %s160_s27, %s160_s27, %s161_s28  }
  0xeb   :  { %155 = dma.done.wait [#allocation3], 256  }
  0xec   :  { %156 = vsyncadd [#allocation3], 4294967040 }
  0xed   :  { %108 = vsyncpa [#allocation3], 1 }

// kernel: self_attention_forward.3
= control target key start
LH: loop header
LB: loop body
LE: loop exit
PB: predicated region body
PF: predicated region fallthrough
CT: control target
= control target key end

     0   :  { %8 = vsyncpa [#allocation3], 0  ;;  %s835_s0 = inlined_call_operand.vmem [shape: bf16[16,32], index: 0, kind: input, shape index: {}]   ;;  %s836_s1 = inlined_call_operand.hbm [shape: bf16[3,32,32], index: 1, kind: input, shape index: {}]   ;;  %s837_s2 = inlined_call_operand.vmem [shape: f32[3,1,32], index: 2, kind: input, shape index: {}]   ;;  %s838_s3 = inlined_call_operand.vmem [shape: bf16[3,16,32], index: 3, kind: output, shape index: {}]  }
   0x1   :  { %10 = vsyncpa [#allocation3 + $0x1], 0  ;;  %s705_s12 = smov 0   ;;  %s707_s13 = smov 0  }
   0x2   :  { %s709_s14 = smov 0   ;;  %s711_s15 = smov 0  }
   0x3   :  { %s713_s16 = smov 0   ;;  %s715_s17 = smov 0  }
   0x4 LB: > { %s500_s18 = sadd.s32 4294967295, %s678_s17   ;;  %s31_s19 = sadd.s32 1, %s674_s16  ;;  %s678_s17 = sphi %s715_s17, %s16_s17   ;;  %s674_s16 = sphi %s713_s16, %s846_s16   ;;  %s670_s15 = sphi %s711_s15, %s845_s15   ;;  %s666_s14 = sphi %s709_s14, %s844_s14   ;;  %s662_s13 = sphi %s707_s13, %s843_s13   ;;  %s658_s12 = sphi %s705_s12, %s842_s12  }
   0x5   : > { %p33_p0 = scmp.ge.s32.totalorder %s31_s19, 3  ;;  %s70_s20 = sadd.s32 1, %s666_s14 }
   0x6   : > { %p77_p1 = scmp.ne.s32.totalorder %s666_s14, %s662_s13  ;;  %p78_p2 = scmp.eq.s32.totalorder %s678_s17, 0 }
   0x7   : > { %s848_s19 = smov (%p33_p0, %s31_s19), 0  ;;  %p83_p4 = scmp.ne.s32.totalorder %s662_s13, %s658_s12 }
   0x8   : > { %p741_p3 = por %p78_p2, %p77_p1  ;;  %s65_s22 = ssub.s32 %s674_s16, %s848_s19 }
   0x9   : > { %p84_p5 = scmp.eq.s32.totalorder %s500_s18, 0  ;;  %p68_p6 = scmp.eq.s32.totalorder %s65_s22, 0 }
   0xa   : > { %p542_p8 = scmp.lt.s32.totalorder %s678_s17, 3  ;;  %s174_s25 = sand.u32 1, %s666_s14  }
   0xb   : > { %p748_p7 = por %p84_p5, %p83_p4  ;;  %s521_s26 = sshll.u32 %s674_s16, 8 }
   0xc   : > { %s754_s24 = scalar_select %p68_p6, %s666_s14, %s70_s20  }
   0xd   : > { %s505_s27 = sshll.u32 %s174_s25, 4  ;;  %s761_s30 = scalar_lea.hbm %s836_s1, %s521_s26 }
   0xe   : > { %s178_s4 = scalar_lea.vmem [#allocation2], %s505_s27  ;;  %p765_p9 = pnand %p542_p8, %p741_p3 }
   0xf   : > { %s186_s5 = sshll.u32 %s178_s4, 4  ;;  %s771_s7 = scalar_lea.sflag [#allocation3], %s174_s25  ;;  %s769_s5 = int_to_ptr.vmem [resolvable:$true] %s186_s5 }
  0x10   : > { %s598_s8 = scalar_lea.hbm %s761_s30, 256  ;;  %p600_p11 = pneg %p765_p9 }
  0x11   : > { %p599_p10 = scmp.ne.s32.totalorder %s761_s30, %s598_s8  ;;  %s603_s11 = scalar_lea.hbm %s836_s1, 768 }
  0x12   : > { %p604_p0 = scmp.lt.u32.totalorder %s761_s30, %s836_s1  ;;  %p605_p1 = scmp.lt.u32.totalorder %s603_s11, %s598_s8 }
  0x13   : > { %p601_p12 = pnand %p600_p11, %p599_p10  ;;  %p607_p3 = scmp.lt.u32.totalorder %s598_s8, %s761_s30 }
  0x14   : > { %p606_p2 = por %p605_p1, %p604_p0 }
  0x15   : > { %p602_p13 = pneg %p601_p12 }
  0x16   : > { %p608_p4 = por %p607_p3, %p606_p2 }
  0x18   : > { %p609_p5 = pnand %p608_p4, %p602_p13 }
  0x1a   : > { %612 = shalt.err (!%p609_p5)
}
  0x1b   : > { %s613_s20 = scalar_lea.vmem %s769_s5, 256  ;;  %s680_s21 = smov [#allocation2]  }
  0x1c   : > { %p614_p6 = scmp.ne.s32.totalorder %s769_s5, %s613_s20  ;;  %s618_s22 = sshll.u32 %s680_s21, 4  ;;  %s619_s22 = int_to_ptr.vmem [resolvable:$false] %s618_s22 }
  0x1d   : > { %s620_s25 = scalar_lea.vmem %s619_s22, 512  ;;  %p621_p12 = scmp.lt.s32.totalorder %s769_s5, %s619_s22 }
  0x1e   : > { %p616_p8 = pnand %p614_p6, %p600_p11  ;;  %p622_p0 = scmp.lt.s32.totalorder %s620_s25, %s613_s20 }
  0x20   : > { %p617_p10 = pneg %p616_p8  ;;  %p623_p1 = por %p622_p0, %p621_p12 }
  0x22   : > { %p624_p2 = pnand %p623_p1, %p617_p10 }
  0x24   : > { %627 = shalt.err (!%p624_p2)
}
  0x25   : > { %s681_s26 = smov 64   ;;  %s682_s27 = smov 4  }
  0x26   : > { %541 = dma.hbm_to_vmem [thread:$0]  (!%p765_p9), %s761_s30, 256, %s769_s5, %s771_s7, %s681_s26, %s681_s26, %s682_s27  }
  0x27   : > { %p508_p11 = scmp.ge.s32.totalorder %s678_s17, 1  ;;  %p203_p13 = scmp.lt.s32.totalorder %s678_s17, 4 }
  0x29   : > { %p204_p3 = pnand %p508_p11, %p203_p13 }
  0x2a   : > { %s209_s28 = sand.u32 (!%p204_p3), 1, %s662_s13  }
  0x2b   : > { %207 = sbr.rel (%p204_p3) target bundleno = 279 (0x117), region = 32  ;;  %s509_s29 = sshll.u32 (!%p204_p3), %s209_s28, 4 }
  0x2c   : > { %s210_s4 = scalar_lea.sflag (!%p204_p3), [#allocation3], %s209_s28  ;;  %s213_s8 = scalar_lea.vmem (!%p204_p3), [#allocation2], %s509_s29 }
  0x32   : > { %653 = dma.done.wait (%p748_p7), %s210_s4, 256  }
  0x33   : > { %655 = vsyncadd (%p748_p7), %s210_s4, 4294967040  ;;  %v683_v0 = vmov 0.0   ;;  %vm684_vm0 = vmmov 0   ;;  %v595_v1 = vld [vmem:[%s213_s8] sm:$0xff]   ;;  %v596_v2 = vld [vmem:[%s213_s8 + $0x8] sm:$0xff]   ;;  %vm310_vm1 = vcmask 261120  }
  0x34   : > { %528 = vmatprep.subr.bf16.mxu0 %v683_v0  ;;  %532 = vmatprep.mubr.msk.bf16.mxu0 %vm684_vm0, %v683_v0  ;;  %v597_v3 = vld [vmem:[%s835_s0] sm:$0xff]   ;;  %p260_p9 = scmp.lt.s32.totalorder %s670_s15, 2  ;;  %vm363_vm2 = vcmask 257024  }
  0x35   : > { %529 = vmatpush3.bf16.msra.mxu0 %v595_v1 }
  0x36   : > { %530 = vmatprep.subr.bf16.mxu0 %v683_v0  ;;  %s850_s15 = smov (!%p260_p9, %s670_s15), 2 }
  0x37   : > { %s265_s7 = scalar_lea.vmem %s837_s2, %s850_s15  ;;  %s522_s9 = sshll.u32 %s850_s15, 3 }
  0x38   : > { %v512_v4 = vld [vmem:[%s265_s7] ss:$0 sm:$0xff]  ;;  %s277_s12 = scalar_lea.vmem %s838_s3, %s522_s9 }
  0x39   : > { %531 = vmatpush3.bf16.msra.mxu0 %v596_v2 }
  0x3c   : > { %533 = vmatmul.mubr.msk.bf16.vlgmr.msra.gmra.mrb[0].mxu0 %vm310_vm1, %v597_v3 }
 0x10f   : > { %v348_v5 = vpop.f32.mrb[0].mxu0 }
 0x110   : > { %v349_v6 = vadd.f32 %v512_v4, %v348_v5  ;;  %v534_v7 = vpop.f32.mrb[1].mxu0 }
 0x111   : > { %v351_v8 = vpop.f32.mrb[2].mxu0 }
 0x112   : > { %v523_v9 = vpack.c.bf16 %v349_v6, %v349_v6  ;;  %v352_v10 = vadd.f32 %v512_v4, %v351_v8  ;;  %v535_v11 = vpop.f32.mrb[3].mxu0 }
 0x114   : > { %364 = vst.msk [vmem:[%s277_s12] sm:$0xf] %vm363_vm2, %v523_v9  ;;  %v524_v12 = vpack.c.bf16 %v352_v10, %v352_v10 }
 0x116   : > { %365 = vst.msk [vmem:[%s277_s12 + $0x4] sm:$0xf] %vm363_vm2, %v524_v12 }
 0x117 PF: > { %s16_s17 = sadd.s32 1, %s678_s17   ;;  %s842_s12 = smov %s662_s13 }
 0x118   : > { %p13_p7 = scmp.ge.s32.totalorder %s16_s17, 5   ;;  %s843_s13 = smov %s666_s14 }
 0x119   : > { %s844_s14 = smov %s754_s24  ;;  %s845_s15 = smov %s674_s16 }
 0x11a   : > { %s846_s16 = smov %s848_s19  ;;  %15 = sbr.rel (!%p13_p7) target bundleno = 4 (0x4), region = 78 }
 0x121   :  { %402 = vsyncpa [#allocation3], 1 }
 0x122   :  { %404 = vsyncpa [#allocation3 + $0x1], 1 }

// kernel: self_attention_forward.4
= control target key start
LH: loop header
LB: loop body
LE: loop exit
PB: predicated region body
PF: predicated region fallthrough
CT: control target
= control target key end

     0   :  { %10 = vsyncpa [#allocation3], 0  ;;  %s1527_s0 = inlined_call_operand.vmem [shape: bf16[3,2,8,32], index: 0, kind: input, shape index: {}, may-alias: {0,1,2}]   ;;  %s1528_s1 = inlined_call_operand.vmem [shape: bf16[3,2,8,32], index: 1, kind: input, shape index: {}, may-alias: {0,1,2}]   ;;  %s1529_s2 = inlined_call_operand.vmem [shape: bf16[3,2,8,32], index: 2, kind: input, shape index: {}, may-alias: {0,1,2}]   ;;  %s1530_s3 = inlined_call_operand.hbm [shape: f32[2,4,8,8], index: 3, kind: output, shape index: {0}]   ;;  %s1531_s4 = inlined_call_operand.vmem [shape: bf16[2,8,32], index: 4, kind: output, shape index: {1}]  }
   0x1   :  { %12 = vsyncpa [#allocation3 + $0x1], 0  ;;  %s1287_s15 = smov 0   ;;  %s1289_s16 = smov 0  }
   0x2   :  { %s1291_s17 = smov 0   ;;  %s1293_s18 = smov 0  }
   0x3   :  { %s1295_s19 = smov 0   ;;  %s1297_s20 = smov 0  }
   0x4 LB: > { %s972_s21 = sadd.s32 4294967295, %s1250_s20   ;;  %s973_s22 = sadd.s32 4294967294, %s1250_s20   ;;  %s1250_s20 = sphi %s1297_s20, %s18_s20   ;;  %s1246_s19 = sphi %s1295_s19, %s1538_s19   ;;  %s1242_s18 = sphi %s1293_s18, %s1537_s18   ;;  %s1238_s17 = sphi %s1291_s17, %s1536_s17   ;;  %s1234_s16 = sphi %s1289_s16, %s1535_s16   ;;  %s1230_s15 = sphi %s1287_s15, %s1534_s15  }
   0x5   : > { %s30_s23 = sadd.s32 1, %s1246_s19  ;;  %s119_s24 = sadd.s32 1, %s1238_s17 }
   0x6   : > { %p32_p0 = scmp.ge.s32.totalorder %s30_s23, 2  ;;  %p129_p1 = scmp.ne.s32.totalorder %s1238_s17, %s1234_s16 }
   0x7   : > { %p130_p2 = scmp.eq.s32.totalorder %s972_s21, 1  ;;  %p135_p3 = scmp.ne.s32.totalorder %s1234_s16, %s1230_s15 }
   0x8   : > { %s1540_s23 = smov (%p32_p0, %s30_s23), 0  ;;  %p136_p5 = scmp.eq.s32.totalorder %s973_s22, 1 }
   0x9   : > { %p1327_p4 = por %p130_p2, %p129_p1  ;;  %s114_s26 = ssub.s32 %s1246_s19, %s1540_s23 }
   0xa   : > { %p976_p6 = scmp.ge.s32.totalorder %s1250_s20, 1  ;;  %p117_p7 = scmp.eq.s32.totalorder %s114_s26, 0 }
   0xb   : > { %p1334_p8 = por %p136_p5, %p135_p3  ;;  %p208_p9 = scmp.lt.s32.totalorder %s1250_s20, 3 }
   0xc   : > { %s1340_s28 = scalar_select %p117_p7, %s1238_s17, %s119_s24  }
   0xd   : > { %p209_p10 = pnand %p976_p6, %p208_p9 }
   0xe   : > { %p253_p11 = scmp.lt.s32.totalorder (!%p209_p10), %s1242_s18, 1  ;;  %v1252_v0 = vmov (!%p209_p10), 0.0   ;;  %vm1253_vm0 = vmmov (!%p209_p10), 0   ;;  %vm291_vm1 = vcmask (!%p209_p10), 64512   ;;  %v280_v5 = vlaneseq (!%p209_p10)  ;;  %s1254_s11 = smov (!%p209_p10), 120  }
   0xf   : > { %212 = sbr.rel (%p209_p10) target bundleno = 1484 (0x5cc), region = 32  ;;  %1038 = vmatprep.subr.bf16.mxu0 (!%p209_p10), %v1252_v0  ;;  %1040 = vmatprep.mubr.msk.bf16.mxu0 (!%p209_p10), %vm1253_vm0, %v1252_v0  ;;  %s1255_s12 = smov (!%p209_p10), 112   ;;  %vm356_vm3 = vcmask (!%p209_p10), 1043456   ;;  %vm401_vm4 = vcmask (!%p209_p10), 60416  }
  0x10   : > { %1044 = vmatprep.subr.bf16.mxu1 (!%p209_p10), %v1252_v0  ;;  %1046 = vmatprep.mubr.msk.bf16.mxu1 (!%p209_p10), %vm1253_vm0, %v1252_v0  ;;  %v1368_v6 = vshrl.u32 (!%p209_p10), %v280_v5, 7  ;;  %v1370_v7 = vand.u32 (!%p209_p10), 127, %v280_v5  ;;  %s1256_s13 = smov (!%p209_p10), 104   ;;  %s241_s24 = sand.u32 (!%p209_p10), 1, %s1234_s16  }
  0x11   : > { %s977_s26 = sshll.u32 (!%p209_p10), %s241_s24, 5  ;;  %s1258_s8 = smov (!%p209_p10), 16  }
  0x12   : > { %vm286_vm2 = vcmp.le.s32.totalorder (!%p209_p10), %v1370_v7, %v1368_v6  ;;  %s1021_s9 = sshll.u32 (!%p209_p10), %s1242_s18, 9  ;;  %s1477_s14 = scalar_lea.sflag (!%p209_p10), [#allocation3], %s241_s24 }
  0x16   : > { %s254_s29 = scalar_select %p253_p11, %s1242_s18, 1 }
  0x17   : > { %s1259_s18 = smov [#allocation2]  }
  0x18   : > { %s1350_s30 = sshll.u32 %s254_s29, 2  ;;  %s1401_s29 = scalar_lea.vmem [#allocation2], %s977_s26 }
  0x19   : > { %s1356_s7 = scalar_lea.vmem %s1528_s1, %s1350_s30  ;;  %s259_s10 = scalar_lea.vmem %s1527_s0, %s1350_s30 }
  0x1a   : > { %v982_v1 = vld [vmem:[%s1356_s7 + $0x8] sm:$0xf]  ;;  %v287_v3 = vld [vmem:[%s259_s10] sm:$0xf]  ;;  %s1390_s22 = scalar_lea.vmem %s1529_s2, %s1350_s30 }
  0x1b   : > { %v296_v2 = vsel %vm291_vm1, %v982_v1, 0  ;;  %v288_v4 = vmul.bf16 1052065461, %v287_v3  ;;  %v1150_v14 = vld [vmem:[%s1356_s7 + $0x8] ss:$0 sps:$4 sm:$0xff]  }
  0x1c   : > { %1039 = vmatpush3.bf16.xpose.msra.mxu0 %v296_v2  ;;  %v403_v15 = vld [vmem:[%s259_s10] sm:$0xf]  ;;  %415 = vrot.lane.b32.xlu1 %v1150_v14, %s1254_s11  ;;  %v1152_v22 = vld [vmem:[%s1356_s7 + $0x8] ss:$0 sps:$4 sm:$0xff]   ;;  %v983_v30 = vld [vmem:[%s1390_s22 + $0x10] sm:$0xf] }
  0x1d   : > { %1056 = vmatprep.subr.bf16.mxu0 %v1252_v0  ;;  %v404_v16 = vmul.bf16 1052065461, %v403_v15  ;;  %v539_v18 = vld [vmem:[%s259_s10] sm:$0xf]  ;;  %v358_v31 = vsel %vm356_vm3, %v983_v30, 0 }
  0x1e   : > { %v540_v19 = vmul.bf16 1052065461, %v539_v18  ;;  %v675_v20 = vld [vmem:[%s259_s10] sm:$0xf]  ;;  %1045 = vmatpush3.bf16.msra.mxu1 %v358_v31  ;;  %v1151_v32 = vld [vmem:[%s1356_s7 + $0x8] ss:$0 sps:$4 sm:$0xff]   ;;  %s1423_s7 = scalar_lea.vmem %s1531_s4, %s1350_s30 }
  0x1f   : > { %v988_v17 = vcombine.low %v404_v16, %v404_v16  ;;  %v676_v23 = vmul.bf16 1052065461, %v675_v20  ;;  %1050 = vmatprep.subr.bf16.mxu1 %v1252_v0  ;;  %v1153_v16 = vld [vmem:[%s1390_s22 + $0x10] ss:$0 sps:$4 sm:$0xff]   ;;  %s1257_s30 = smov 8   ;;  %s833_s10 = sshll.u32 %s1401_s29, 4  ;;  %s1473_s10 = int_to_ptr.vmem [resolvable:$true] %s833_s10 }
  0x20   : > { %v997_v21 = vcombine.low %v540_v19, %v540_v19  ;;  %s1172_s21 = scalar_lea.vmem %s1473_s10, 512 }
  0x21   : > { %410 = vrot.lane.b32.xlu1 %v988_v17, %s1254_s11  ;;  %v1006_v24 = vcombine.low %v676_v23, %v676_v23  ;;  %v1154_v17 = vld [vmem:[%s1390_s22 + $0x10] ss:$0 sps:$4 sm:$0xff]   ;;  %p1173_p12 = scmp.ne.s32.totalorder %s1473_s10, %s1172_s21 }
  0x22   : > { %v1155_v23 = vld [vmem:[%s1390_s22 + $0x10] ss:$0 sps:$4 sm:$0xff]   ;;  %s1176_s22 = sshll.u32 %s1259_s18, 4  ;;  %s1177_s22 = int_to_ptr.vmem [resolvable:$false] %s1176_s22 }
  0x23   : > { %1041 = vmatmul.mubr.msk.bf16.vlgmr.msra.gmra.mrb[0].mxu0 %vm291_vm1, %v288_v4  ;;  %p1174_p13 = pnand %p1173_p12, %p1327_p4  ;;  %s1178_s26 = scalar_lea.vmem %s1177_s22, 1024 }
  0x24   : > { %1058 = vmatprep.mubr.msk.bf16.mxu0 %vm1253_vm0, %v1252_v0  ;;  %p1179_p1 = scmp.lt.s32.totalorder %s1473_s10, %s1177_s22  ;;  %p1180_p2 = scmp.lt.s32.totalorder %s1178_s26, %s1172_s21 }
  0x25   : > { %546 = vrot.lane.b32.xlu1 %v997_v21, %s1255_s12  ;;  %p1175_p0 = pneg %p1174_p13 }
  0x26   : > { %p1181_p3 = por %p1180_p2, %p1179_p1 }
  0x28   : > { %p1182_p5 = pnand %p1181_p3, %p1175_p0 }
  0x29   : > { %687 = vrot.lane.b32.xlu1 %v1152_v22, %s1256_s13 }
  0x2d   : > { %682 = vrot.lane.b32.xlu1 %v1006_v24, %s1256_s13 }
  0x8e   : > { %v416_v35 = vpop.permute.xlu1 %415 }
  0x8f   : > { %v421_v37 = vsel %vm291_vm1, %v416_v35, 0 }
  0x93   : > { %v411_v39 = vpop.permute.xlu1 %410 }
  0x97   : > { %v547_v41 = vpop.permute.xlu1 %546 }
  0x9b   : > { %v688_v43 = vpop.permute.xlu1 %687 }
  0x9c   : > { %v693_v44 = vsel %vm291_vm1, %v688_v43, 0 }
  0x9f   : > { %v683_v45 = vpop.permute.xlu1 %682 }
  0xf6   : > { %v332_v8 = vpop.f32.mrb[0].mxu0 }
  0xf7   : > { %v338_v9 = vsel %vm286_vm2, %v332_v8, -inf  ;;  %v1042_v10 = vpop.f32.mrb[1].mxu0 }
  0xf8   : > { %v335_v11 = vpop.f32.mrb[2].mxu0  ;;  %v339_v12 = vsel %vm291_vm1, %v338_v9, -inf }
  0xf9   : > { %340 = vmax.xlane.f32.xlu0 %v339_v12  ;;  %v1043_v13 = vpop.f32.mrb[3].mxu0 }
 0x186   : > { %v341_v25 = vpop.xlane.xlu0 %340 }
 0x187   : > { %v342_v26 = vsub.f32 %v338_v9, %v341_v25 }
 0x189   : > { %v343_v27 = vmul.f32 1.442695, %v342_v26 }
 0x18b   : > { %1156 = vpow2.f32 %v343_v27 }
 0x195   : > { %v1157_v28 = vpop.eup %1156 }
 0x196   : > { %v345_v29 = vsel %vm291_vm1, %v1157_v28, 0.0 }
 0x197   : > { %346 = vadd.xlane.f32.xlu0 %v345_v29 }
 0x1ad   : > { %551 = vrot.lane.b32.xlu0 %v1151_v32, %s1255_s12 }
 0x224   : > { %v347_v33 = vpop.xlane.xlu0 %346 }
 0x225   : > { %1158 = vrcp.f32 %v347_v33 }
 0x228   : > { %v552_v40 = vpop.permute.xlu0 %551 }
 0x229   : > { %v557_v42 = vsel %vm291_vm1, %v552_v40, 0 }
 0x22f   : > { %v1159_v34 = vpop.eup %1158 }
 0x230   : > { %v350_v36 = vmul.f32 %v1159_v34, %v1157_v28 }
 0x232   : > { %351 = vst.msk [vmem:[%s1401_s29] sm:$0xff] %vm291_vm1, %v350_v36  ;;  %v352_v38 = vpack.c.bf16 %v350_v36, %v350_v36 }
 0x234   : > { %1047 = vmatmul.mubr.msk.bf16.vlgmr.msra.gmra.mrb[0].mxu1 %vm291_vm1, %v352_v38 }
 0x235   : > { %1051 = vmatpush3.bf16.xpose.msra.mxu1 %v421_v37  ;;  %1052 = vmatprep.mubr.msk.bf16.mxu1 %vm1253_vm0, %v1252_v0 }
 0x236   : > { %1062 = vmatprep.subr.bf16.mxu1 %v1252_v0 }
 0x23c   : > { %1053 = vmatmul.mubr.msk.bf16.vlgmr.msra.gmra.mrb[4].mxu1 %vm291_vm1, %v411_v39 }
 0x23d   : > { %1063 = vmatpush3.bf16.xpose.msra.mxu1 %v557_v42  ;;  %1064 = vmatprep.mubr.msk.bf16.mxu1 %vm1253_vm0, %v1252_v0 }
 0x23e   : > { %1074 = vmatprep.subr.bf16.mxu1 %v1252_v0 }
 0x244   : > { %1065 = vmatmul.mubr.msk.bf16.vlgmr.msra.gmra.mrb[8].mxu1 %vm291_vm1, %v547_v41 }
 0x245   : > { %1075 = vmatpush3.bf16.xpose.msra.mxu1 %v693_v44  ;;  %1076 = vmatprep.mubr.msk.bf16.mxu1 %vm1253_vm0, %v1252_v0 }
 0x24c   : > { %1077 = vmatmul.mubr.msk.bf16.vlgmr.msra.gmra.mrb[12].mxu1 %vm291_vm1, %v683_v45 }
 0x307   : > { %v394_v46 = vpop.f32.mrb[0].mxu1 }
 0x308   : > { %v400_v47 = vpack.c.bf16 %v394_v46, %v394_v46  ;;  %v1048_v48 = vpop.f32.mrb[1].mxu1 }
 0x309   : > { %v397_v49 = vpop.f32.mrb[2].mxu1 }
 0x30a   : > { %402 = vst.msk [vmem:[%s1423_s7] sm:$0xf] %vm401_vm4, %v400_v47  ;;  %v1049_v50 = vpop.f32.mrb[3].mxu1 }
 0x30f   : > { %v457_v51 = vpop.f32.mrb[4].mxu1 }
 0x310   : > { %v463_v52 = vsel %vm286_vm2, %v457_v51, -inf  ;;  %v1054_v53 = vpop.f32.mrb[5].mxu1 }
 0x311   : > { %v460_v54 = vpop.f32.mrb[6].mxu1  ;;  %v464_v55 = vsel %vm291_vm1, %v463_v52, -inf }
 0x312   : > { %465 = vmax.xlane.f32.xlu1 %v464_v55  ;;  %v1055_v56 = vpop.f32.mrb[7].mxu1 }
 0x317   : > { %v593_v57 = vpop.f32.mrb[8].mxu1 }
 0x318   : > { %v599_v58 = vsel %vm286_vm2, %v593_v57, -inf  ;;  %v1066_v59 = vpop.f32.mrb[9].mxu1 }
 0x319   : > { %v600_v60 = vsel %vm291_vm1, %v599_v58, -inf  ;;  %v596_v61 = vpop.f32.mrb[10].mxu1 }
 0x31a   : > { %601 = vmax.xlane.f32.xlu0 %v600_v60  ;;  %v1067_v62 = vpop.f32.mrb[11].mxu1 }
 0x31f   : > { %v729_v63 = vpop.f32.mrb[12].mxu1 }
 0x320   : > { %v735_v1 = vsel %vm286_vm2, %v729_v63, -inf  ;;  %v1078_v2 = vpop.f32.mrb[13].mxu1 }
 0x321   : > { %v736_v3 = vsel %vm291_vm1, %v735_v1, -inf  ;;  %v732_v4 = vpop.f32.mrb[14].mxu1 }
 0x322   : > { %737 = vmax.xlane.f32.xlu1 %v736_v3  ;;  %v1079_v5 = vpop.f32.mrb[15].mxu1 }
 0x39f   : > { %v466_v8 = vpop.xlane.xlu1 %465 }
 0x3a0   : > { %v467_v9 = vsub.f32 %v463_v52, %v466_v8 }
 0x3a2   : > { %v468_v10 = vmul.f32 1.442695, %v467_v9 }
 0x3a4   : > { %1160 = vpow2.f32 %v468_v10 }
 0x3a7   : > { %v602_v11 = vpop.xlane.xlu0 %601 }
 0x3a8   : > { %v603_v12 = vsub.f32 %v599_v58, %v602_v11 }
 0x3aa   : > { %v604_v13 = vmul.f32 1.442695, %v603_v12 }
 0x3ac   : > { %1162 = vpow2.f32 %v604_v13 }
 0x3ae   : > { %v1161_v14 = vpop.eup %1160 }
 0x3af   : > { %v470_v6 = vsel %vm291_vm1, %v1161_v14, 0.0  ;;  %v738_v18 = vpop.xlane.xlu1 %737 }
 0x3b0   : > { %471 = vadd.xlane.f32.xlu1 %v470_v6  ;;  %v739_v19 = vsub.f32 %v735_v1, %v738_v18 }
 0x3b2   : > { %v740_v20 = vmul.f32 1.442695, %v739_v19 }
 0x3b4   : > { %1164 = vpow2.f32 %v740_v20 }
 0x3b6   : > { %v1163_v7 = vpop.eup %1162 }
 0x3b7   : > { %v606_v15 = vsel %vm291_vm1, %v1163_v7, 0.0 }
 0x3b8   : > { %607 = vadd.xlane.f32.xlu0 %v606_v15 }
 0x3be   : > { %v1165_v21 = vpop.eup %1164 }
 0x3bf   : > { %v742_v22 = vsel %vm291_vm1, %v1165_v21, 0.0 }
 0x3c1   : > { %618 = vrot.lane.b32.xlu1 %v1153_v16, %s1255_s12 }
 0x3ce   : > { %482 = vrot.lane.b32.xlu0 %v1154_v17, %s1254_s11 }
 0x3e5   : > { %743 = vadd.xlane.f32.xlu1 %v742_v22 }
 0x3f6   : > { %754 = vrot.lane.b32.xlu1 %v1155_v23, %s1256_s13  ;;  %s1471_s13 = scalar_lea.hbm %s1530_s3, %s1021_s9 }
 0x43d   : > { %v472_v24 = vpop.xlane.xlu1 %471 }
 0x43e   : > { %1166 = vrcp.f32 %v472_v24 }
 0x441   : > { %v619_v30 = vpop.permute.xlu1 %618 }
 0x442   : > { %v624_v32 = vsel %vm356_vm3, %v619_v30, 0 }
 0x445   : > { %v608_v25 = vpop.xlane.xlu0 %607 }
 0x446   : > { %1168 = vrcp.f32 %v608_v25 }
 0x448   : > { %v1167_v26 = vpop.eup %1166 }
 0x449   : > { %v475_v27 = vmul.f32 %v1167_v26, %v1161_v14  ;;  %v483_v28 = vpop.permute.xlu0 %482 }
 0x44a   : > { %v488_v29 = vsel %vm356_vm3, %v483_v28, 0 }
 0x44b   : > { %991 = vst.msk [vmem:[%s1401_s29 + $0x8] sm:$0xff] %vm291_vm1, %v475_v27  ;;  %1057 = vmatpush3.bf16.msra.mxu0 %v488_v29  ;;  %v478_v31 = vpack.c.bf16 %v475_v27, %v475_v27 }
 0x44c   : > { %1068 = vmatprep.subr.bf16.mxu0 %v1252_v0 }
 0x44e   : > { %1059 = vmatmul.mubr.msk.bf16.vlgmr.msra.gmra.mrb[4].mxu0 %vm291_vm1, %v478_v31 }
 0x44f   : > { %1069 = vmatpush3.bf16.msra.mxu0 %v624_v32  ;;  %1070 = vmatprep.mubr.msk.bf16.mxu0 %vm1253_vm0, %v1252_v0 }
 0x450   : > { %v1169_v33 = vpop.eup %1168  ;;  %1080 = vmatprep.subr.bf16.mxu0 %v1252_v0 }
 0x451   : > { %v611_v34 = vmul.f32 %v1169_v33, %v1163_v7 }
 0x453   : > { %1000 = vst.msk [vmem:[%s1401_s29 + $0x10] sm:$0xff] %vm291_vm1, %v611_v34  ;;  %v614_v35 = vpack.c.bf16 %v611_v34, %v611_v34 }
 0x456   : > { %1071 = vmatmul.mubr.msk.bf16.vlgmr.msra.gmra.mrb[8].mxu0 %vm291_vm1, %v614_v35 }
 0x457   : > { %1082 = vmatprep.mubr.msk.bf16.mxu0 %vm1253_vm0, %v1252_v0 }
 0x472   : > { %v744_v36 = vpop.xlane.xlu1 %743 }
 0x473   : > { %1170 = vrcp.f32 %v744_v36 }
 0x476   : > { %v755_v37 = vpop.permute.xlu1 %754 }
 0x477   : > { %v760_v38 = vsel %vm356_vm3, %v755_v37, 0 }
 0x478   : > { %1081 = vmatpush3.bf16.msra.mxu0 %v760_v38 }
 0x47d   : > { %v1171_v39 = vpop.eup %1170 }
 0x47e   : > { %v747_v40 = vmul.f32 %v1171_v39, %v1165_v21 }
 0x480   : > { %1009 = vst.msk [vmem:[%s1401_s29 + $0x18] sm:$0xff] %vm291_vm1, %v747_v40  ;;  %v750_v41 = vpack.c.bf16 %v747_v40, %v747_v40 }
 0x482   : > { %1083 = vmatmul.mubr.msk.bf16.vlgmr.msra.gmra.mrb[12].mxu0 %vm291_vm1, %v750_v41 }
 0x521   : > { %v524_v42 = vpop.f32.mrb[4].mxu0 }
 0x522   : > { %v1018_v43 = vpack.c.bf16 %v524_v42, %v524_v42  ;;  %v1060_v44 = vpop.f32.mrb[5].mxu0 }
 0x523   : > { %v527_v0 = vpop.f32.mrb[6].mxu0 }
 0x524   : > { %534 = vrot.lane.b32.xlu0 %v1018_v43, %s1257_s30  ;;  %v1061_v45 = vpop.f32.mrb[7].mxu0 }
 0x529   : > { %v660_v46 = vpop.f32.mrb[8].mxu0 }
 0x52a   : > { %v1019_v47 = vpack.c.bf16 %v660_v46, %v660_v46  ;;  %v1072_v48 = vpop.f32.mrb[9].mxu0 }
 0x52b   : > { %v663_v49 = vpop.f32.mrb[10].mxu0 }
 0x52c   : > { %670 = vrot.lane.b32.xlu1 %v1019_v47, %s1258_s8  ;;  %v1073_v50 = vpop.f32.mrb[11].mxu0 }
 0x52d   : > { %1185 = shalt.err (!%p1182_p5)
}
 0x52e   : > { %s1186_s24 = scalar_lea.hbm %s1471_s13, 512  ;;  %s1190_s6 = scalar_lea.hbm %s1530_s3, 1024 }
 0x52f   : > { %p1187_p6 = scmp.ne.s32.totalorder %s1471_s13, %s1186_s24  ;;  %p1191_p10 = scmp.lt.u32.totalorder %s1471_s13, %s1530_s3 }
 0x530   : > { %p1192_p11 = scmp.lt.u32.totalorder %s1190_s6, %s1186_s24  ;;  %p1194_p13 = scmp.lt.u32.totalorder %s1186_s24, %s1471_s13 }
 0x531   : > { %p1188_p7 = pnand %p1187_p6, %p1327_p4 }
 0x532   : > { %p1193_p12 = por %p1192_p11, %p1191_p10 }
 0x533   : > { %p1189_p9 = pneg %p1188_p7 }
 0x534   : > { %p1195_p0 = por %p1194_p13, %p1193_p12 }
 0x536   : > { %p1196_p1 = pnand %p1195_p0, %p1189_p9 }
 0x538   : > { %1199 = shalt.err (!%p1196_p1)
}
 0x539   : > { %s1260_s11 = smov 128   ;;  %s1261_s12 = smov 24   ;;  %vm537_vm5 = vcmask 126016   ;;  %vm673_vm6 = vcmask 191616   ;;  %vm809_vm7 = vcmask 257216  }
 0x53a   : > { %1086 = dma.vmem_to_hbm [thread:$0]  (%p1327_p4), %s1473_s10, 512, %s1471_s13, %s1477_s14, %s1260_s11, %s1260_s11, %s1257_s30  }
 0x555   : > { %v796_v51 = vpop.f32.mrb[12].mxu0 }
 0x556   : > { %v1020_v52 = vpack.c.bf16 %v796_v51, %v796_v51  ;;  %v1084_v53 = vpop.f32.mrb[13].mxu0 }
 0x557   : > { %v799_v54 = vpop.f32.mrb[14].mxu0 }
 0x558   : > { %806 = vrot.lane.b32.xlu0 %v1020_v52, %s1261_s12  ;;  %v1085_v55 = vpop.f32.mrb[15].mxu0 }
 0x596   : > { %v535_v56 = vpop.permute.xlu0 %534 }
 0x597   : > { %538 = vst.msk [vmem:[%s1423_s7] sm:$0xf] %vm537_vm5, %v535_v56 }
 0x59e   : > { %v671_v57 = vpop.permute.xlu1 %670 }
 0x59f   : > { %674 = vst.msk [vmem:[%s1423_s7] sm:$0xf] %vm673_vm6, %v671_v57 }
 0x5ca   : > { %v807_v58 = vpop.permute.xlu0 %806 }
 0x5cb   : > { %810 = vst.msk [vmem:[%s1423_s7] sm:$0xf] %vm809_vm7, %v807_v58 }
 0x5cc PF: > { %p1092_p4 = scmp.ge.s32.totalorder %s1250_s20, 2  ;;  %s851_s25 = sand.u32 1, %s1230_s15  }
 0x5cd   : > { %s852_s30 = scalar_lea.sflag [#allocation3], %s851_s25 }
 0x5ce   : > { %p1089_p2 = pnand %p1092_p4, %p1334_p8 }
 0x5d0   : > { %1225 = dma.done.wait (!%p1089_p2), %s852_s30, 512  }
 0x5d1   : > { %1227 = vsyncadd (!%p1089_p2), %s852_s30, 4294966784  ;;  %s18_s20 = sadd.s32 1, %s1250_s20   ;;  %s1534_s15 = smov %s1234_s16 }
 0x5d2   : > { %p15_p3 = scmp.ge.s32.totalorder %s18_s20, 4   ;;  %s1535_s16 = smov %s1238_s17 }
 0x5d3   : > { %s1536_s17 = smov %s1340_s28  ;;  %s1537_s18 = smov %s1246_s19 }
 0x5d4   : > { %s1538_s19 = smov %s1540_s23  ;;  %17 = sbr.rel (!%p15_p3) target bundleno = 4 (0x4), region = 88 }
 0x5db   :  { %867 = vsyncpa [#allocation3], 1 }
 0x5dc   :  { %869 = vsyncpa [#allocation3 + $0x1], 1 }

</bundles_post_ra>
